<compile_context>
chip_gen: v5e
topology: v5e:2x2
jax: 0.10.0
libtpu: 0.0.40
codegen_flags: <defaults>
</compile_context>

<pallas_src>
import math

import jax
import jax.numpy as jnp
from jax.experimental import pallas as pl
from jax.experimental.pallas import tpu as pltpu


# ---------------------------------------------------------------------------
# Tile selection: pick (G heads per step, TQ query rows per step) so that the
# per-step VMEM footprint (double-buffered I/O + f32 temporaries) stays under
# a conservative budget that fits every TPU generation's scoped VMEM.
# ---------------------------------------------------------------------------
def _divisors_desc(n):
    return [d for d in range(n, 0, -1) if n % d == 0]


def _select_tiles(H, Lq, Lk, Dk, Dv, itemsize, budget=12 * 1024 * 1024):
    def footprint(G, TQ):
        io = G * (TQ * Dk + Lk * Dk + Lk * Dv + TQ * Dv + TQ * Lk) * itemsize
        tmp = G * (TQ * Lk + TQ * Dv) * 4 * 2  # f32 score/exp + f32 acc temporaries
        return 2 * io + tmp                    # x2: Pallas double-buffers I/O

    if Lq <= 512:
        tq_candidates = [Lq] + [d for d in _divisors_desc(Lq) if d < Lq and d % 8 == 0]
    else:
        tq_candidates = [d for d in _divisors_desc(Lq) if d <= 512 and d % 8 == 0]
        if not tq_candidates:
            tq_candidates = [Lq]

    for TQ in tq_candidates:
        for G in _divisors_desc(H):
            if footprint(G, TQ) <= budget:
                return G, TQ
    return 1, tq_candidates[-1]


# ---------------------------------------------------------------------------
# Kernel
# ---------------------------------------------------------------------------
def _make_kernel(inv_temperature, has_mask, return_attn):
    def kernel(*refs):
        if has_mask:
            q_ref, k_ref, v_ref, m_ref = refs[:4]
            out_refs = refs[4:]
            mask = m_ref[...]                      # (Gm, TQ, Lk), Gm in {1, G}
        else:
            q_ref, k_ref, v_ref = refs[:3]
            out_refs = refs[3:]
            mask = None

        # Fused 1/temperature scale on load; stays in the input dtype (so bf16
        # inputs feed the MXU as bf16, matching torch's (q/temperature) @ k^T).
        q = q_ref[...] * jnp.asarray(inv_temperature, q_ref.dtype)   # (G, TQ, Dk)
        k = k_ref[...]                                               # (G, Lk, Dk)
        v = v_ref[...]                                               # (G, Lk, Dv)

        # Scores for all G heads of this group: (G, TQ, Lk), f32 accumulation.
        s = jnp.einsum("gqd,gkd->gqk", q, k, preferred_element_type=jnp.float32)

        if mask is not None:
            # masked_fill(mask == 0, -1e9) — exact torch semantics (incl. the
            # fully-masked-row -> uniform softmax corner case).
            s = jnp.where(mask == 0, jnp.float32(-1e9), s)

        # Softmax along Lk in f32.
        m = jnp.max(s, axis=-1, keepdims=True)
        e = jnp.exp(s - m)
        denom = jnp.sum(e, axis=-1, keepdims=True)
        attn = e * pl.reciprocal(denom, approx=False)

        # Output: (G, TQ, Dv); second matmul in input dtype, f32 accumulation.
        out = jnp.einsum("gqk,gkd->gqd", attn.astype(v.dtype), v,
                         preferred_element_type=jnp.float32)

        o_ref = out_refs[0]
        o_ref[...] = out.astype(o_ref.dtype)
        if return_attn:
            a_ref = out_refs[1]
            a_ref[...] = attn.astype(a_ref.dtype)   # input dtype, not f32

    return kernel


# ---------------------------------------------------------------------------
# Wrapper
# ---------------------------------------------------------------------------
def scaled_dot_product_attention(q, k, v, temperature, mask=None, return_attn=True):
    """q: (B,H,Lq,Dk), k: (B,H,Lk,Dk), v: (B,H,Lk,Dv),
    mask broadcastable to (B,H,Lq,Lk).  Returns (output, attn) like the torch
    module; with return_attn=False the attention map is never materialized and
    None is returned in its place."""
    B, H, Lq, Dk = q.shape
    Lk = k.shape[2]
    Dv = v.shape[3]

    inv_temperature = 1.0 / float(temperature)
    itemsize = jnp.dtype(q.dtype).itemsize
    G, TQ = _select_tiles(H, Lq, Lk, Dk, Dv, itemsize)
    grid = (B, H // G, Lq // TQ)

    in_specs = [
        pl.BlockSpec((None, G, TQ, Dk), lambda b, hg, qt: (b, hg, qt, 0)),
        pl.BlockSpec((None, G, Lk, Dk), lambda b, hg, qt: (b, hg, 0, 0)),
        pl.BlockSpec((None, G, Lk, Dv), lambda b, hg, qt: (b, hg, 0, 0)),
    ]
    inputs = [q, k, v]

    has_mask = mask is not None
    if has_mask:
        mask = jnp.asarray(mask)
        while mask.ndim < 4:
            mask = mask[None]
        # Keep the native head dim (usually 1): no H-fold broadcast in HBM.
        Hm = H if mask.shape[1] == H else 1
        mask4 = jnp.broadcast_to(mask, (B, Hm, Lq, Lk)).astype(jnp.int32)
        if Hm == H:
            m_spec = pl.BlockSpec((None, G, TQ, Lk), lambda b, hg, qt: (b, hg, qt, 0))
        else:
            m_spec = pl.BlockSpec((None, 1, TQ, Lk), lambda b, hg, qt: (b, 0, qt, 0))
        in_specs.append(m_spec)
        inputs.append(mask4)

    o_shape = jax.ShapeDtypeStruct((B, H, Lq, Dv), q.dtype)
    o_spec = pl.BlockSpec((None, G, TQ, Dv), lambda b, hg, qt: (b, hg, qt, 0))
    if return_attn:
        a_shape = jax.ShapeDtypeStruct((B, H, Lq, Lk), q.dtype)
        a_spec = pl.BlockSpec((None, G, TQ, Lk), lambda b, hg, qt: (b, hg, qt, 0))
        out_shape = (o_shape, a_shape)
        out_specs = (o_spec, a_spec)
    else:
        out_shape = o_shape
        out_specs = o_spec

    kernel = _make_kernel(inv_temperature, has_mask, return_attn)

    result = pl.pallas_call(
        kernel,
        out_shape=out_shape,
        grid=grid,
        in_specs=in_specs,
        out_specs=out_specs,
        compiler_params=pltpu.CompilerParams(
            dimension_semantics=("parallel", "parallel", "parallel"),
            vmem_limit_bytes=48 * 1024 * 1024,
        ),
    )(*inputs)

    if return_attn:
        output, attn = result
        return output, attn
    return result, None


# ---------------------------------------------------------------------------
# Pure-JAX reference (eval-mode forward of the torch module)
# ---------------------------------------------------------------------------
def _reference(q, k, v, temperature, mask=None):
    s = jnp.einsum("bhqd,bhkd->bhqk", q / temperature, k)
    if mask is not None:
        s = jnp.where(mask == 0, -1e9, s)
    attn = jax.nn.softmax(s, axis=-1)
    out = jnp.einsum("bhqk,bhkd->bhqd", attn, v)
    return out, attn


if __name__ == "__main__":
    key = jax.random.PRNGKey(0)
    kq, kk, kv, km = jax.random.split(key, 4)

    B, H, Lq, Lk, Dk, Dv = 2, 4, 8, 8, 32, 32
    temperature = math.sqrt(Dk)

    q = jax.random.normal(kq, (B, H, Lq, Dk), dtype=jnp.float32)
    k = jax.random.normal(kk, (B, H, Lk, Dk), dtype=jnp.float32)
    v = jax.random.normal(kv, (B, H, Lk, Dv), dtype=jnp.float32)
    mask = (jax.random.uniform(km, (B, 1, Lq, Lk)) > 0.2).astype(jnp.int32)

    # no-mask path
    out, attn = scaled_dot_product_attention(q, k, v, temperature, mask=None)
    jax.block_until_ready((out, attn))
    out_ref, attn_ref = _reference(q, k, v, temperature, mask=None)
    assert jnp.allclose(out, out_ref, atol=2e-5, rtol=2e-5)
    assert jnp.allclose(attn, attn_ref, atol=2e-5, rtol=2e-5)

    # masked path
    out_m, attn_m = scaled_dot_product_attention(q, k, v, temperature, mask=mask)
    jax.block_until_ready((out_m, attn_m))
    out_mr, attn_mr = _reference(q, k, v, temperature, mask=mask)
    assert jnp.allclose(out_m, out_mr, atol=2e-5, rtol=2e-5)
    assert jnp.allclose(attn_m, attn_mr, atol=2e-5, rtol=2e-5)

    # output-only path (attn map never written to HBM)
    out_f, attn_f = scaled_dot_product_attention(q, k, v, temperature, mask=mask,
                                                 return_attn=False)
    jax.block_until_ready(out_f)
    assert attn_f is None
    assert jnp.allclose(out_f, out_mr, atol=2e-5, rtol=2e-5)

    print("KERNEL_OK")
</pallas_src>

<mosaic_0001>
module attributes {stable_mosaic.version = 11 : i64} {
  func.func @kernel(%arg0: i32, %arg1: i32, %arg2: i32, %arg3: memref<1x4x8x32xf32, #tpu.memory_space<vmem>>, %arg4: memref<1x4x8x32xf32, #tpu.memory_space<vmem>>, %arg5: memref<1x4x8x32xf32, #tpu.memory_space<vmem>>, %arg6: memref<1x4x8x32xf32, #tpu.memory_space<vmem>>, %arg7: memref<1x4x8x8xf32, #tpu.memory_space<vmem>>) attributes {dimension_semantics = [#tpu.dimension_semantics<parallel>, #tpu.dimension_semantics<parallel>, #tpu.dimension_semantics<parallel>], iteration_bounds = array<i64: 2, 1, 1>, scalar_prefetch = 0 : i64, scratch_operands = 0 : i64, tpu.core_type = #tpu.core_type<tc>, window_params = [{transform_indices = @transform_0, window_bounds = array<i64: 1, 4, 8, 32>}, {transform_indices = @transform_1, window_bounds = array<i64: 1, 4, 8, 32>}, {transform_indices = @transform_2, window_bounds = array<i64: 1, 4, 8, 32>}, {transform_indices = @transform_3, window_bounds = array<i64: 1, 4, 8, 32>}, {transform_indices = @transform_4, window_bounds = array<i64: 1, 4, 8, 8>}]} {
    %c0 = arith.constant 0 : index
    %c0_0 = arith.constant 0 : index
    %c0_1 = arith.constant 0 : index
    %c0_2 = arith.constant 0 : index
    %0 = vector.load %arg3[%c0, %c0_0, %c0_1, %c0_2] : memref<1x4x8x32xf32, #tpu.memory_space<vmem>>, vector<1x4x8x32xf32>
    %1 = vector.shape_cast %0 : vector<1x4x8x32xf32> to vector<4x8x32xf32>
    %cst = arith.constant 0.176776692 : f32
    %2 = vector.broadcast %cst : f32 to vector<4x8x32xf32>
    %3 = arith.mulf %1, %2 : vector<4x8x32xf32>
    %c0_3 = arith.constant 0 : index
    %c0_4 = arith.constant 0 : index
    %c0_5 = arith.constant 0 : index
    %c0_6 = arith.constant 0 : index
    %4 = vector.load %arg4[%c0_3, %c0_4, %c0_5, %c0_6] : memref<1x4x8x32xf32, #tpu.memory_space<vmem>>, vector<1x4x8x32xf32>
    %5 = vector.shape_cast %4 : vector<1x4x8x32xf32> to vector<4x8x32xf32>
    %c0_7 = arith.constant 0 : index
    %c0_8 = arith.constant 0 : index
    %c0_9 = arith.constant 0 : index
    %c0_10 = arith.constant 0 : index
    %6 = vector.load %arg5[%c0_7, %c0_8, %c0_9, %c0_10] : memref<1x4x8x32xf32, #tpu.memory_space<vmem>>, vector<1x4x8x32xf32>
    %7 = vector.shape_cast %6 : vector<1x4x8x32xf32> to vector<4x8x32xf32>
    "tpu.trace_start"() <{level = 10 : i32, message = "gqd,gkd->gqk"}> : () -> ()
    %cst_11 = arith.constant dense<0.000000e+00> : vector<4x8x8xf32>
    %8 = tpu.matmul %3, %5, %cst_11 {dimension_numbers = #tpu.dot_dimension_numbers<[2], [2], [1], [1], [0, 0, 0, 1, 1, 1], [0], [0]>} : vector<4x8x32xf32>, vector<4x8x32xf32>, vector<4x8x8xf32> -> vector<4x8x8xf32>
    "tpu.trace_stop"() : () -> ()
    %cst_12 = arith.constant dense<0xFF800000> : vector<4x8xf32>
    %9 = vector.multi_reduction <maximumf>, %8, %cst_12 [2] : vector<4x8x8xf32> to vector<4x8xf32>
    %10 = vector.shape_cast %9 : vector<4x8xf32> to vector<4x8x1xf32>
    %11 = vector.broadcast %10 : vector<4x8x1xf32> to vector<4x8x8xf32>
    %12 = arith.subf %8, %11 : vector<4x8x8xf32>
    %13 = math.exp %12 : vector<4x8x8xf32>
    %cst_13 = arith.constant dense<0.000000e+00> : vector<4x8xf32>
    %14 = vector.multi_reduction <add>, %13, %cst_13 [2] : vector<4x8x8xf32> to vector<4x8xf32>
    %15 = vector.shape_cast %14 : vector<4x8xf32> to vector<4x8x1xf32>
    %16 = tpu.reciprocal %15 : vector<4x8x1xf32> -> vector<4x8x1xf32>
    %17 = vector.broadcast %16 : vector<4x8x1xf32> to vector<4x8x8xf32>
    %18 = arith.mulf %13, %17 : vector<4x8x8xf32>
    "tpu.trace_start"() <{level = 10 : i32, message = "gqk,gkd->gqd"}> : () -> ()
    %cst_14 = arith.constant dense<0.000000e+00> : vector<4x8x32xf32>
    %19 = tpu.matmul %18, %7, %cst_14 {dimension_numbers = #tpu.dot_dimension_numbers<[2], [1], [1], [2], [0, 0, 0, 1, 1, 2], [0], [0]>} : vector<4x8x8xf32>, vector<4x8x32xf32>, vector<4x8x32xf32> -> vector<4x8x32xf32>
    "tpu.trace_stop"() : () -> ()
    %c0_15 = arith.constant 0 : index
    %c0_16 = arith.constant 0 : index
    %c0_17 = arith.constant 0 : index
    %c0_18 = arith.constant 0 : index
    %20 = vector.load %arg6[%c0_15, %c0_16, %c0_17, %c0_18] : memref<1x4x8x32xf32, #tpu.memory_space<vmem>>, vector<1x4x8x32xf32>
    %21 = vector.shape_cast %20 : vector<1x4x8x32xf32> to vector<4x8x32xf32>
    %22 = vector.shape_cast %19 : vector<4x8x32xf32> to vector<1x4x8x32xf32>
    tpu.vector_store %arg6[%c0_15, %c0_16, %c0_17, %c0_18], %22 {strides = array<i32>} : memref<1x4x8x32xf32, #tpu.memory_space<vmem>>, vector<1x4x8x32xf32>,
    %c0_19 = arith.constant 0 : index
    %c0_20 = arith.constant 0 : index
    %c0_21 = arith.constant 0 : index
    %c0_22 = arith.constant 0 : index
    %23 = vector.load %arg7[%c0_19, %c0_20, %c0_21, %c0_22] : memref<1x4x8x8xf32, #tpu.memory_space<vmem>>, vector<1x4x8x8xf32>
    %24 = vector.shape_cast %23 : vector<1x4x8x8xf32> to vector<4x8x8xf32>
    %25 = vector.shape_cast %18 : vector<4x8x8xf32> to vector<1x4x8x8xf32>
    tpu.vector_store %arg7[%c0_19, %c0_20, %c0_21, %c0_22], %25 {strides = array<i32>} : memref<1x4x8x8xf32, #tpu.memory_space<vmem>>, vector<1x4x8x8xf32>,
    return
  }
  func.func @transform_0(%arg0: i32, %arg1: i32, %arg2: i32) -> (i32, i32, i32, i32) {
    %c0_i32 = arith.constant 0 : i32
    %c0_i32_0 = arith.constant 0 : i32
    return %arg0, %arg1, %arg2, %c0_i32 : i32, i32, i32, i32
  }
  func.func @transform_1(%arg0: i32, %arg1: i32, %arg2: i32) -> (i32, i32, i32, i32) {
    %c0_i32 = arith.constant 0 : i32
    %c0_i32_0 = arith.constant 0 : i32
    %c0_i32_1 = arith.constant 0 : i32
    return %arg0, %arg1, %c0_i32, %c0_i32_0 : i32, i32, i32, i32
  }
  func.func @transform_2(%arg0: i32, %arg1: i32, %arg2: i32) -> (i32, i32, i32, i32) {
    %c0_i32 = arith.constant 0 : i32
    %c0_i32_0 = arith.constant 0 : i32
    %c0_i32_1 = arith.constant 0 : i32
    return %arg0, %arg1, %c0_i32, %c0_i32_0 : i32, i32, i32, i32
  }
  func.func @transform_3(%arg0: i32, %arg1: i32, %arg2: i32) -> (i32, i32, i32, i32) {
    %c0_i32 = arith.constant 0 : i32
    %c0_i32_0 = arith.constant 0 : i32
    return %arg0, %arg1, %arg2, %c0_i32 : i32, i32, i32, i32
  }
  func.func @transform_4(%arg0: i32, %arg1: i32, %arg2: i32) -> (i32, i32, i32, i32) {
    %c0_i32 = arith.constant 0 : i32
    %c0_i32_0 = arith.constant 0 : i32
    return %arg0, %arg1, %arg2, %c0_i32 : i32, i32, i32, i32
  }
}

</mosaic_0001>

<bundles_post_ra>
// kernel: tpu_custom_call.1
= control target key start
LH: loop header
LB: loop body
LE: loop exit
PB: predicated region body
PF: predicated region fallthrough
CT: control target
= control target key end

     0   :  { %s1512_s0 = inlined_call_operand.hbm [shape: f32[2,4,8,32], index: 0, kind: input, shape index: {}]   ;;  %s1513_s1 = inlined_call_operand.hbm [shape: f32[2,4,8,32], index: 1, kind: input, shape index: {}]   ;;  %s1514_s2 = inlined_call_operand.hbm [shape: f32[2,4,8,32], index: 2, kind: input, shape index: {}]   ;;  %s1515_s3 = inlined_call_operand.hbm [shape: f32[2,4,8,32], index: 3, kind: output, shape index: {0}]   ;;  %s1516_s4 = inlined_call_operand.hbm [shape: f32[2,4,8,8], index: 4, kind: output, shape index: {1}]  }
   0x1   :  { %1523 = sst [smem:[#allocation21_spill]] %s1513_s1 }
   0x2   :  { %10 = vsyncpa [#allocation3], 0 }
   0x3   :  { %12 = vsyncpa [#allocation3 + $0x1], 0 }
   0x4   :  { %13 = vsyncpa [#allocation6], 0 }
   0x5   :  { %15 = vsyncpa [#allocation6 + $0x1], 0 }
   0x6   :  { %16 = vsyncpa [#allocation4], 0 }
   0x7   :  { %18 = vsyncpa [#allocation4 + $0x1], 0 }
   0x8   :  { %19 = vsyncpa [#allocation10], 0 }
   0x9   :  { %21 = vsyncpa [#allocation10 + $0x1], 0  ;;  %s1277_s15 = smov 0   ;;  %s1279_s16 = smov 0  }
   0xa   :  { %s1281_s17 = smov 0   ;;  %s1283_s18 = smov 0  }
   0xb   :  { %s1285_s19 = smov 0   ;;  %s1287_s20 = smov 0  }
   0xc LB: > { %1524 = sst [smem:[#allocation15_spill]] %s1234_s17  ;;  %s1308_s21 = sadd.s32 4294967295, %s1246_s20   ;;  %s1246_s20 = sphi %s1287_s20, %s27_s20   ;;  %s1242_s19 = sphi %s1285_s19, %s1542_s19   ;;  %s1238_s18 = sphi %s1283_s18, %s1541_s18   ;;  %s1234_s17 = sphi %s1281_s17, %s1540_s17   ;;  %s1230_s16 = sphi %s1279_s16, %s1544_s16   ;;  %s1226_s15 = sphi %s1277_s15, %s1543_s15  }
   0xd   : > { %1525 = sst [smem:[#allocation16_spill]] %s1242_s19  ;;  %s898_s22 = sadd.s32 4294967294, %s1246_s20  }
   0xe   : > { %1526 = sst [smem:[#allocation17_spill]] %s1246_s20  ;;  %s46_s23 = sadd.s32 1, %s1242_s19 }
   0xf   : > { %s57_s24 = sadd.s32 1, %s1234_s17  ;;  %p48_p0 = scmp.ge.s32.totalorder %s46_s23, 2 }
  0x10   : > { %p64_p1 = scmp.ne.s32.totalorder %s1234_s17, %s1230_s16  ;;  %p65_p2 = scmp.eq.s32.totalorder %s1246_s20, 0 }
  0x11   : > { %p70_p3 = scmp.ne.s32.totalorder %s1230_s16, %s1226_s15  ;;  %s1546_s23 = smov (%p48_p0, %s46_s23), 0 }
  0x12   : > { %1527 = sst [smem:[#allocation18_spill]] %s1546_s23  ;;  %p1320_p4 = por %p65_p2, %p64_p1 }
  0x13   : > { %p71_p5 = scmp.eq.s32.totalorder %s1308_s21, 0  ;;  %s50_s26 = ssub.s32 %s1242_s19, %s1546_s23 }
  0x14   : > { %p154_p6 = scmp.eq.s32.totalorder %s1308_s21, 1  ;;  %p55_p7 = scmp.eq.s32.totalorder %s50_s26, 0 }
  0x15   : > { %p1328_p8 = por %p71_p5, %p70_p3  ;;  %p160_p10 = scmp.eq.s32.totalorder %s898_s22, 1 }
  0x16   : > { %p1332_p9 = por %p154_p6, %p64_p1  ;;  %p900_p12 = scmp.ge.s32.totalorder %s1246_s20, 2 }
  0x17   : > { %s1337_s29 = scalar_select %p55_p7, %s1234_s17, %s57_s24  }
  0x18   : > { %p1339_p11 = por %p160_p10, %p70_p3  ;;  %p968_p13 = scmp.lt.s32.totalorder %s1246_s20, 2 }
  0x19   : > { %1531 = sst [smem:[#allocation19_spill]] %s1337_s29  ;;  %s210_s5 = sand.u32 1, %s1234_s17  }
  0x1a   : > { %s1532_s30 = scalar_select %p1339_p11, 1, 0 }
  0x1b   : > { %s1346_s6 = sshll.u32 %s210_s5, 5  ;;  %s936_s7 = sshll.u32 %s1242_s19, 5 }
  0x1c   : > { %1533 = sst [smem:[#allocation20_spill]] %s1532_s30  ;;  %p1351_p0 = pnand %p968_p13, %p1320_p4 }
  0x1d   : > { %s235_s9 = sand.u32 1, %s1246_s20   ;;  %s1535_s1 = sld [smem:[#allocation21_spill]] }
  0x1e   : > { %s239_s14 = scalar_lea.vmem [#allocation5], %s1346_s6  ;;  %s236_s24 = scalar_lea.sflag [#allocation6], %s235_s9 }
  0x1f   : > { %s249_s22 = sshll.u32 %s239_s14, 4  ;;  %s1248_s26 = smov 128   ;;  %s250_s22 = int_to_ptr.vmem [resolvable:$true] %s249_s22 }
  0x20   : > { %s1249_s25 = smov 8   ;;  %p910_p1 = scmp.ge.s32.totalorder %s1246_s20, 1 }
  0x21   : > { %p281_p2 = scmp.lt.s32.totalorder %s1246_s20, 3  ;;  %s211_s9 = scalar_lea.sflag [#allocation3], %s210_s5 }
  0x22   : > { %s270_s29 = scalar_lea.hbm %s1514_s2, %s936_s7  ;;  %s263_s20 = scalar_lea.vmem [#allocation7], %s1346_s6 }
  0x23   : > { %s246_s12 = scalar_lea.hbm %s1535_s1, %s936_s7  ;;  %p1364_p3 = pnand %p910_p1, %p281_p2 }
  0x24   : > { %s247_s13 = sshll.u32 %s246_s12, 4  ;;  %s222_s12 = scalar_lea.hbm %s1512_s0, %s936_s7  ;;  %s248_s13 = int_to_ptr.hbm [resolvable:$true] %s247_s13 }
  0x25   : > { %957 = dma.hbm_to_vmem [thread:$0]  (!%p1351_p0), %s248_s13, 512, %s250_s22, %s236_s24, %s1248_s26, %s1248_s26, %s1249_s25  }
  0x26   : > { %s223_s14 = sshll.u32 %s222_s12, 4  ;;  %s214_s1 = scalar_lea.vmem [#allocation2], %s1346_s6  ;;  %s224_s14 = int_to_ptr.hbm [resolvable:$true] %s223_s14 }
  0x27   : > { %s225_s19 = sshll.u32 %s214_s1, 4  ;;  %s271_s17 = sshll.u32 %s270_s29, 4  ;;  %s226_s19 = int_to_ptr.vmem [resolvable:$true] %s225_s19  ;;  %s272_s17 = int_to_ptr.hbm [resolvable:$true] %s271_s17 }
  0x28   : > { %954 = dma.hbm_to_vmem [thread:$0]  (!%p1351_p0), %s224_s14, 512, %s226_s19, %s211_s9, %s1248_s26, %s1248_s26, %s1249_s25  }
  0x29   : > { %s273_s30 = sshll.u32 %s263_s20, 4  ;;  %285 = sbr.rel (%p1364_p3) target bundleno = 593 (0x251), region = 32  ;;  %s274_s30 = int_to_ptr.vmem [resolvable:$true] %s273_s30 }
  0x2a   : > { %960 = dma.hbm_to_vmem [thread:$0]  (!%p1351_p0), %s272_s17, 512, %s274_s30, %s236_s24, %s1248_s26, %s1248_s26, %s1249_s25  }
  0x2b   : > { %s1383_s1 = sand.u32 (!%p1364_p3), 1, %s1230_s16  }
  0x2c   : > { %s1386_s19 = sshll.u32 (!%p1364_p3), %s1383_s1, 5  ;;  %s288_s5 = scalar_lea.sflag (!%p1364_p3), [#allocation3], %s1383_s1 }
  0x2d   : > { %s291_s29 = scalar_lea.vmem (!%p1364_p3), [#allocation2], %s1386_s19 }
  0x2e   : > { %1209 = dma.done.wait (%p1328_p8), %s288_s5, 512  }
  0x2f   : > { %1211 = vsyncadd (%p1328_p8), %s288_s5, 4294966784  ;;  %s297_s17 = sand.u32 1, %s1308_s21   ;;  %s301_s23 = scalar_lea.vmem [#allocation5], %s1386_s19 }
  0x30   : > { %s298_s20 = scalar_lea.sflag [#allocation6], %s297_s17 }
  0x31   : > { %1213 = dma.done.wait (%p1328_p8), %s298_s20, 1024  }
  0x32   : > { %1215 = vsyncadd (%p1328_p8), %s298_s20, 4294966272  ;;  %vm373_vm0 = vcmask 261120   ;;  %v365_v0 = vld [vmem:[%s301_s23] sm:$0xff]  ;;  %v367_v1 = vld [vmem:[%s301_s23 + $0x10] sm:$0xff]  ;;  %vm478_vm1 = vcmask 64512   ;;  %s311_s21 = scalar_lea.vmem [#allocation7], %s1386_s19 }
  0x33   : > { %v357_v2 = vld [vmem:[%s291_s29] sm:$0xff]  ;;  %916 = vmatpush.xpose.msk.msra.mxu0 %vm373_vm0, %v365_v0  ;;  %920 = vmatpush.xpose.msk.msra.mxu2 %vm373_vm0, %v367_v1  ;;  %v359_v4 = vld [vmem:[%s291_s29 + $0x10] sm:$0xff]  ;;  %v366_v5 = vld [vmem:[%s301_s23 + $0x8] sm:$0xff]  ;;  %s1428_s27 = scalar_lea.vmem [#allocation9], %s1386_s19  ;;  %s939_s30 = sshll.u32 %s1238_s18, 5 }
  0x34   : > { %v361_v3 = vmul.f32 0.17677669, %v357_v2  ;;  %v368_v6 = vld [vmem:[%s301_s23 + $0x18] sm:$0xff]  ;;  %v363_v7 = vmul.f32 0.17677669, %v359_v4  ;;  %918 = vmatpush.xpose.msk.msra.mxu1 %vm373_vm0, %v366_v5  ;;  %v358_v8 = vld [vmem:[%s291_s29 + $0x8] sm:$0xff]  ;;  %s715_s8 = scalar_lea.hbm %s1516_s4, %s939_s30 }
  0x35   : > { %922 = vmatpush.xpose.msk.msra.mxu3 %vm373_vm0, %v368_v6  ;;  %v360_v9 = vld [vmem:[%s291_s29 + $0x18] sm:$0xff]  ;;  %v362_v10 = vmul.f32 0.17677669, %v358_v8  ;;  %v369_v40 = vld [vmem:[%s311_s21] sm:$0xff]  ;;  %v371_v41 = vld [vmem:[%s311_s21 + $0x10] sm:$0xff]  ;;  %s716_s24 = sshll.u32 %s1428_s27, 4  ;;  %s717_s24 = int_to_ptr.vmem [resolvable:$true] %s716_s24 }
  0x36   : > { %v364_v11 = vmul.f32 0.17677669, %v360_v9  ;;  %917 = vmatmul.msk.f32.vlgmr.msra.gmra.mxu0 %vm373_vm0, %v361_v3  ;;  %921 = vmatmul.msk.f32.vlgmr.msra.gmra.mxu2 %vm373_vm0, %v363_v7  ;;  %v370_v42 = vld [vmem:[%s311_s21 + $0x8] sm:$0xff]  ;;  %v372_v43 = vld [vmem:[%s311_s21 + $0x18] sm:$0xff]  ;;  %s718_s26 = sshll.u32 %s715_s8, 4  ;;  %s681_s25 = scalar_lea.sflag [#allocation10], %s1383_s1  ;;  %s719_s26 = int_to_ptr.hbm [resolvable:$true] %s718_s26 }
  0x37   : > { %919 = vmatmul.msk.f32.vlgmr.msra.gmra.mxu1 %vm373_vm0, %v362_v10  ;;  %593 = vmatpush.msrb.mxu0 %v369_v40  ;;  %s1142_s10 = sshra.s32 %s719_s26, 4  ;;  %s1148_s9 = scalar_lea.hbm %s1516_s4, 64  ;;  %s1143_s10 = int_to_ptr.hbm [resolvable:$true] %s1142_s10 }
  0x38   : > { %923 = vmatmul.msk.f32.vlgmr.msra.gmra.mxu3 %vm373_vm0, %v364_v11  ;;  %639 = vmatpush.msrb.mxu2 %v371_v41  ;;  %s1144_s11 = scalar_lea.hbm %s1143_s10, 32  ;;  %p1149_p7 = scmp.lt.s32.totalorder %s1143_s10, %s1516_s4 }
  0x39   : > { %616 = vmatpush.msrb.mxu1 %v370_v42  ;;  %662 = vmatpush.msrb.mxu3 %v372_v43  ;;  %p1145_p4 = scmp.ne.s32.totalorder %s1143_s10, %s1144_s11  ;;  %p1150_p8 = scmp.lt.s32.totalorder %s1148_s9, %s1144_s11 }
  0x3b   : > { %p1146_p5 = pnand %p1145_p4, %p1332_p9  ;;  %p1151_p10 = por %p1150_p8, %p1149_p7 }
  0x3d   : > { %p1147_p6 = pneg %p1146_p5 }
  0x3f   : > { %p1152_p13 = pnand %p1151_p10, %p1147_p6 }
  0xb3   : > { %v397_v12 = vpop.f32.mrf.mxu0 }
  0xb4   : > { %v479_v13 = vsel %vm478_vm1, %v397_v12, -inf  ;;  %v423_v14 = vpop.f32.mrf.mxu1 }
  0xb5   : > { %480 = vmax.xlane.f32.xlu1 %v479_v13  ;;  %v482_v17 = vsel %vm478_vm1, %v423_v14, -inf }
  0xb9   : > { %v449_v15 = vpop.f32.mrf.mxu2 }
  0xba   : > { %v485_v16 = vsel %vm478_vm1, %v449_v15, -inf }
  0xbb   : > { %486 = vmax.xlane.f32.xlu0 %v485_v16  ;;  %v475_v18 = vpop.f32.mrf.mxu3 }
  0xbc   : > { %v488_v19 = vsel %vm478_vm1, %v475_v18, -inf }
  0xbd   : > { %483 = vmax.xlane.f32.xlu1 %v482_v17 }
  0xc3   : > { %489 = vmax.xlane.f32.xlu0 %v488_v19 }
 0x128   : > { %v481_v20 = vpop.xlane.xlu1 %480 }
 0x129   : > { %v491_v21 = vsub.f32 %v397_v12, %v481_v20 }
 0x12b   : > { %v495_v22 = vmul.f32 1.442695, %v491_v21 }
 0x12d   : > { %1022 = vpow2.f32 %v495_v22 }
 0x12e   : > { %v487_v23 = vpop.xlane.xlu0 %486 }
 0x12f   : > { %v493_v24 = vsub.f32 %v449_v15, %v487_v23 }
 0x130   : > { %v484_v25 = vpop.xlane.xlu1 %483 }
 0x131   : > { %v499_v26 = vmul.f32 1.442695, %v493_v24  ;;  %v492_v27 = vsub.f32 %v423_v14, %v484_v25 }
 0x133   : > { %v1023_v28 = vpop.eup %1022  ;;  %1024 = vpow2.f32 %v499_v26  ;;  %v497_v29 = vmul.f32 1.442695, %v492_v27 }
 0x134   : > { %v503_v30 = vsel %vm478_vm1, %v1023_v28, 0.0 }
 0x135   : > { %1026 = vpow2.f32 %v497_v29  ;;  %504 = vadd.xlane.f32.xlu0 %v503_v30 }
 0x136   : > { %v490_v31 = vpop.xlane.xlu0 %489 }
 0x137   : > { %v494_v32 = vsub.f32 %v475_v18, %v490_v31 }
 0x139   : > { %v1413_v33 = vpop.eup %1024  ;;  %v501_v34 = vmul.f32 1.442695, %v494_v32 }
 0x13a   : > { %v509_v35 = vsel %vm478_vm1, %v1413_v33, 0.0 }
 0x13b   : > { %v1417_v36 = vpop.eup %1026  ;;  %1028 = vpow2.f32 %v501_v34  ;;  %510 = vadd.xlane.f32.xlu2 %v509_v35 }
 0x13c   : > { %v506_v37 = vsel %vm478_vm1, %v1417_v36, 0.0 }
 0x13d   : > { %507 = vadd.xlane.f32.xlu1 %v506_v37 }
 0x141   : > { %v1421_v38 = vpop.eup %1028 }
 0x142   : > { %v512_v39 = vsel %vm478_vm1, %v1421_v38, 0.0 }
 0x143   : > { %513 = vadd.xlane.f32.xlu2 %v512_v39 }
 0x1a8   : > { %v505_v44 = vpop.xlane.xlu0 %504 }
 0x1a9   : > { %1030 = vrcp.f32 %v505_v44  ;;  %v526_v50 = vand.u32 2147483648, %v505_v44  ;;  %v524_v52 = vand.u32 2147483647, %v505_v44  ;;  %vm520_vm3 = vweird.f32 %v505_v44 }
 0x1ab   : > { %v527_v58 = vor.u32 1.1754944e-38, %v526_v50  ;;  %vm525_vm5 = vcmp.eq.f32.partialorder %v524_v52, 8.507059e+37 }
 0x1ae   : > { %v511_v45 = vpop.xlane.xlu2 %510 }
 0x1af   : > { %v1031_v46 = vpop.eup %1030  ;;  %1032 = vrcp.f32 %v511_v45  ;;  %v552_v62 = vand.u32 2147483647, %v511_v45  ;;  %v554_v63 = vand.u32 2147483648, %v511_v45  ;;  %vm548_vm7 = vweird.f32 %v511_v45 }
 0x1b0   : > { %v516_v47 = vmul.f32 %v1031_v46, %v505_v44  ;;  %v508_v48 = vpop.xlane.xlu1 %507  ;;  %vm521_vm2 = vweird.f32 %v1031_v46 }
 0x1b1   : > { %1034 = vrcp.f32 %v508_v48  ;;  %vm522_vm4 = vmor %vm520_vm3, %vm521_vm2  ;;  %v540_v4 = vand.u32 2147483648, %v508_v48  ;;  %v538_v7 = vand.u32 2147483647, %v508_v48  ;;  %vm553_vm10 = vcmp.eq.f32.partialorder %v552_v62, 8.507059e+37 }
 0x1b2   : > { %v517_v49 = vsub.f32 1.0, %v516_v47  ;;  %v555_v9 = vor.u32 1.1754944e-38, %v554_v63  ;;  %vm534_vm11 = vweird.f32 %v508_v48 }
 0x1b3   : > { %v541_v13 = vor.u32 1.1754944e-38, %v540_v4  ;;  %vm539_vm13 = vcmp.eq.f32.partialorder %v538_v7, 8.507059e+37 }
 0x1b4   : > { %v518_v51 = vmul.f32 %v1031_v46, %v517_v49 }
 0x1b5   : > { %v1033_v53 = vpop.eup %1032 }
 0x1b6   : > { %v519_v54 = vadd.f32 %v1031_v46, %v518_v51  ;;  %v544_v55 = vmul.f32 %v1033_v53, %v511_v45  ;;  %v514_v56 = vpop.xlane.xlu2 %513  ;;  %vm549_vm6 = vweird.f32 %v1033_v53 }
 0x1b7   : > { %v1035_v57 = vpop.eup %1034  ;;  %1036 = vrcp.f32 %v514_v56  ;;  %vm550_vm9 = vmor %vm548_vm7, %vm549_vm6  ;;  %v568_v18 = vand.u32 2147483648, %v514_v56  ;;  %v566_v21 = vand.u32 2147483647, %v514_v56  ;;  %vm562_vm15 = vweird.f32 %v514_v56 }
 0x1b8   : > { %v523_v59 = vsel %vm522_vm4, %v1031_v46, %v519_v54  ;;  %v545_v60 = vsub.f32 1.0, %v544_v55  ;;  %v530_v61 = vmul.f32 %v1035_v57, %v508_v48  ;;  %vm535_vm8 = vweird.f32 %v1035_v57 }
 0x1b9   : > { %v528_v0 = vsel %vm525_vm5, %v527_v58, %v523_v59  ;;  %vm536_vm12 = vmor %vm534_vm11, %vm535_vm8  ;;  %v569_v24 = vor.u32 1.1754944e-38, %v568_v18  ;;  %vm567_vm3 = vcmp.eq.f32.partialorder %v566_v21, 8.507059e+37 }
 0x1ba   : > { %v546_v1 = vmul.f32 %v1033_v53, %v545_v60  ;;  %v531_v2 = vsub.f32 1.0, %v530_v61  ;;  %v571_v3 = vmul.f32 %v1023_v28, %v528_v0 }
 0x1bc   : > { %v547_v5 = vadd.f32 %v1033_v53, %v546_v1  ;;  %v532_v6 = vmul.f32 %v1035_v57, %v531_v2  ;;  %924 = vmatmul.msk.f32.vlgmr.msrb.gmra.mxu0 %vm478_vm1, %v571_v3  ;;  %671 = vst.msk [vmem:[%s1428_s27] sm:$0xff] %vm478_vm1, %v571_v3 }
 0x1bd   : > { %v1037_v8 = vpop.eup %1036 }
 0x1be   : > { %v533_v10 = vadd.f32 %v1035_v57, %v532_v6  ;;  %v558_v11 = vmul.f32 %v1037_v8, %v514_v56  ;;  %v551_v12 = vsel %vm550_vm9, %v1033_v53, %v547_v5  ;;  %vm563_vm14 = vweird.f32 %v1037_v8 }
 0x1bf   : > { %v556_v14 = vsel %vm553_vm10, %v555_v9, %v551_v12  ;;  %vm564_vm2 = vmor %vm562_vm15, %vm563_vm14 }
 0x1c0   : > { %v537_v15 = vsel %vm536_vm12, %v1035_v57, %v533_v10  ;;  %v559_v16 = vsub.f32 1.0, %v558_v11  ;;  %v573_v17 = vmul.f32 %v1413_v33, %v556_v14 }
 0x1c1   : > { %v542_v19 = vsel %vm539_vm13, %v541_v13, %v537_v15 }
 0x1c2   : > { %v560_v20 = vmul.f32 %v1037_v8, %v559_v16  ;;  %926 = vmatmul.msk.f32.vlgmr.msrb.gmra.mxu2 %vm478_vm1, %v573_v17  ;;  %673 = vst.msk [vmem:[%s1428_s27 + $0x10] sm:$0xff] %vm478_vm1, %v573_v17  ;;  %v572_v22 = vmul.f32 %v1417_v36, %v542_v19 }
 0x1c4   : > { %v561_v23 = vadd.f32 %v1037_v8, %v560_v20  ;;  %925 = vmatmul.msk.f32.vlgmr.msrb.gmra.mxu1 %vm478_vm1, %v572_v22  ;;  %672 = vst.msk [vmem:[%s1428_s27 + $0x8] sm:$0xff] %vm478_vm1, %v572_v22 }
 0x1c6   : > { %v565_v25 = vsel %vm564_vm2, %v1037_v8, %v561_v23 }
 0x1c7   : > { %v570_v26 = vsel %vm567_vm3, %v569_v24, %v565_v25 }
 0x1c8   : > { %v574_v27 = vmul.f32 %v1421_v38, %v570_v26 }
 0x1ca   : > { %927 = vmatmul.msk.f32.vlgmr.msrb.gmra.mxu3 %vm478_vm1, %v574_v27  ;;  %674 = vst.msk [vmem:[%s1428_s27 + $0x18] sm:$0xff] %vm478_vm1, %v574_v27 }
 0x1cb   : > { %1155 = shalt.err (!%p1152_p13)
}
 0x1cc   : > { %s1250_s5 = smov 128   ;;  %s1251_s29 = smov 8  }
 0x1cd   : > { %948 = dma.vmem_to_hbm [thread:$0]  (%p1332_p9), %s717_s24, 512, %s719_s26, %s681_s25, %s1250_s5, %s1250_s5, %s1251_s29  }
 0x1ce   : > { %s344_s17 = scalar_lea.vmem [#allocation8], %s1386_s19  ;;  %s695_s21 = scalar_lea.hbm %s1515_s3, %s939_s30 }
 0x1cf   : > { %s696_s27 = sshll.u32 %s344_s17, 4  ;;  %s698_s6 = sshll.u32 %s695_s21, 4  ;;  %s697_s27 = int_to_ptr.vmem [resolvable:$true] %s696_s27  ;;  %s699_s6 = int_to_ptr.hbm [resolvable:$true] %s698_s6 }
 0x1d0   : > { %s676_s19 = scalar_lea.sflag [#allocation4], %s1383_s1  ;;  %s1170_s7 = sshra.s32 %s699_s6, 4  ;;  %s1171_s7 = int_to_ptr.hbm [resolvable:$true] %s1170_s7 }
 0x1d1   : > { %s1172_s8 = scalar_lea.hbm %s1171_s7, 32  ;;  %s1176_s26 = scalar_lea.hbm %s1515_s3, 64 }
 0x1d2   : > { %p1173_p0 = scmp.ne.s32.totalorder %s1171_s7, %s1172_s8  ;;  %p1177_p3 = scmp.lt.s32.totalorder %s1171_s7, %s1515_s3 }
 0x1d3   : > { %p1178_p4 = scmp.lt.s32.totalorder %s1176_s26, %s1172_s8 }
 0x1d4   : > { %p1174_p1 = pnand %p1173_p0, %p1332_p9 }
 0x1d5   : > { %p1179_p5 = por %p1178_p4, %p1177_p3 }
 0x1d6   : > { %p1175_p2 = pneg %p1174_p1 }
 0x1d8   : > { %p1180_p6 = pnand %p1179_p5, %p1175_p2 }
 0x239   : > { %v595_v28 = vpop.f32.mrf.mxu0 }
 0x23a   : > { %667 = vst.msk [vmem:[%s344_s17] sm:$0xff] %vm373_vm0, %v595_v28 }
 0x241   : > { %v618_v29 = vpop.f32.mrf.mxu1 }
 0x242   : > { %668 = vst.msk [vmem:[%s344_s17 + $0x8] sm:$0xff] %vm373_vm0, %v618_v29 }
 0x245   : > { %v641_v30 = vpop.f32.mrf.mxu2 }
 0x246   : > { %669 = vst.msk [vmem:[%s344_s17 + $0x10] sm:$0xff] %vm373_vm0, %v641_v30 }
 0x24d   : > { %v664_v31 = vpop.f32.mrf.mxu3 }
 0x24e   : > { %670 = vst.msk [vmem:[%s344_s17 + $0x18] sm:$0xff] %vm373_vm0, %v664_v31 }
 0x24f   : > { %1183 = shalt.err (!%p1180_p6)
}
 0x250   : > { %947 = dma.vmem_to_hbm [thread:$0]  (%p1332_p9), %s697_s27, 512, %s699_s6, %s676_s19, %s1250_s5, %s1250_s5, %s1251_s29  }
 0x251 PF: > { %s1538_s10 = sld [smem:[#allocation17_spill]]  ;;  %s733_s11 = sand.u32 1, %s1226_s15  }
 0x252   : > { %p962_p7 = pnand %p900_p12, %p1339_p11  ;;  %s734_s12 = scalar_lea.sflag [#allocation4], %s733_s11 }
 0x254   : > { %p963_p8 = pneg %p962_p7 }
 0x256   : > { %1217 = dma.done.wait (%p963_p8), %s734_s12, 512  }
 0x257   : > { %1219 = vsyncadd (%p963_p8), %s734_s12, 4294966784  ;;  %s744_s14 = scalar_lea.sflag [#allocation10], %s733_s11 }
 0x258   : > { %1221 = dma.done.wait (%p963_p8), %s744_s14, 512  }
 0x259   : > { %1223 = vsyncadd (%p963_p8), %s744_s14, 4294966784  ;;  %s27_s20 = sadd.s32 1, %s1538_s10   ;;  %s1539_s28 = sld [smem:[#allocation15_spill]] }
 0x25a   : > { %p24_p10 = scmp.ge.s32.totalorder %s27_s20, 4   ;;  %s1540_s17 = sld [smem:[#allocation19_spill]] }
 0x25b   : > { %s1541_s18 = sld [smem:[#allocation16_spill]]  ;;  %s1543_s15 = smov %s1230_s16 }
 0x25c   : > { %s1542_s19 = sld [smem:[#allocation18_spill]]  ;;  %26 = sbr.rel (!%p24_p10) target bundleno = 12 (0xc), region = 118 }
 0x25f   : > { %s1544_s16 = smov %s1539_s28 }
 0x261   :  { %750 = vsyncpa [#allocation3], 1 }
 0x262   :  { %752 = vsyncpa [#allocation3 + $0x1], 1 }
 0x263   :  { %753 = vsyncpa [#allocation6], 1 }
 0x264   :  { %755 = vsyncpa [#allocation6 + $0x1], 1 }
 0x265   :  { %756 = vsyncpa [#allocation4], 1 }
 0x266   :  { %758 = vsyncpa [#allocation4 + $0x1], 1 }
 0x267   :  { %759 = vsyncpa [#allocation10], 1 }
 0x268   :  { %761 = vsyncpa [#allocation10 + $0x1], 1 }

</bundles_post_ra>
